<compile_context>
chip_gen: v7x
topology: tpu7x:2x2x1
jax: 0.10.0
libtpu: 0.0.40
codegen_flags: <defaults>
</compile_context>

<pallas_src>
import functools

import numpy as np

import jax
import jax.numpy as jnp
from jax import lax
from jax.experimental import pallas as pl
from jax.experimental.pallas import tpu as pltpu

EPS = 1e-5                       # PyTorch BatchNorm2d default eps
COMPUTE_DTYPE = jnp.bfloat16     # MXU operand dtype (f32 accumulation)


# ---------------------------------------------------------------------------
# VMEM budgeting helpers
# ---------------------------------------------------------------------------
def _ceil_to(a, b):
    return -(-a // b) * b


def _padded_bytes(shape, dtype):
    """Rough lane/sublane-padded VMEM footprint of one block."""
    dims = [d for d in shape if d is not None]
    itemsize = np.dtype(dtype).itemsize
    if not dims:
        return itemsize
    if len(dims) == 1:
        return _ceil_to(dims[0], 128) * itemsize
    lead = 1
    for d in dims[:-2]:
        lead *= d
    return lead * _ceil_to(dims[-2], 8) * _ceil_to(dims[-1], 128) * itemsize


def _vmem_limit(block_bytes, scratch_bytes):
    # double-buffered I/O blocks + scratch + headroom; <= 32 MiB so it fits the
    # 64 MiB/TC budget of v7x (128 MiB on v5e/v6e) with room for the pipeline.
    need = 2 * block_bytes + scratch_bytes + (4 << 20)
    return int(min(max(need, 4 << 20), 32 << 20))


# ---------------------------------------------------------------------------
# Kernel 1: fused 3x3/stride-1/pad-1 conv + folded BN (+residual) (+ReLU)
#   - horizontal taps + horizontal zero padding folded into banded weights
#   - vertical 1-row halo kept in a tiny VMEM scratch
# ---------------------------------------------------------------------------
def _conv3x3_bn_kernel(x_ref, w_ref, bias_ref, *rest, apply_relu, fuse_residual):
    # x_ref:    (H, W*Cin)             activations (f32 or bf16)
    # w_ref:    (3, W*Cin, W*Cout)     banded weights, BN scale folded (bf16)
    # bias_ref: (1, W*Cout)            folded BN bias, tiled over W (f32)
    # res_ref:  (H, W*Cout)            optional residual (f32), added pre-ReLU
    # o_ref:    (H, W*Cout)
    # xv:       (H+2, W*Cin)           VMEM scratch: vertical zero halo only
    if fuse_residual:
        res_ref, o_ref, xv = rest
    else:
        o_ref, xv = rest
    H, WCin = x_ref.shape

    # Zero only the two halo rows (horizontal padding lives in the weights);
    # the interior is overwritten every grid step.
    zrow = jnp.zeros((1, WCin), xv.dtype)
    xv[0:1, :] = zrow
    xv[H + 1:H + 2, :] = zrow
    xv[1:H + 1, :] = x_ref[...].astype(xv.dtype)       # cast f32->bf16 in VMEM

    # 3 MXU matmuls (one per kernel row), straight accumulation chain
    # (MRB-friendly on v7x); operands are Ref slices -> no resident slab.
    acc = jnp.dot(xv[1:H + 1, :], w_ref[1], preferred_element_type=jnp.float32)
    acc = acc + jnp.dot(xv[0:H, :], w_ref[0], preferred_element_type=jnp.float32)
    acc = acc + jnp.dot(xv[2:H + 2, :], w_ref[2], preferred_element_type=jnp.float32)

    out = acc + bias_ref[...]                          # folded BN bias (f32)
    if fuse_residual:
        out = out + res_ref[...].astype(jnp.float32)
    if apply_relu:
        out = jnp.maximum(out, 0.0)
    o_ref[...] = out.astype(o_ref.dtype)               # one lane-dense(r) store


def _banded_weights(w_scaled, W):
    """Fold the horizontal conv taps + zero padding into banded matrices.

    w_scaled: (3, 3, Cin, Cout) f32 (BN scale already folded in).
    Returns (3, W*Cin, W*Cout) with
      BW[dh][win*Cin + i, wout*Cout + o] = w_scaled[dh, win - wout + 1, i, o]
    for win in [wout-1, wout+1] inside the image, 0 otherwise.
    """
    _, _, Cin, Cout = w_scaled.shape
    P = np.zeros((3, W, W), np.float32)                # P[dw, win, wout]
    for dw in range(3):
        for wout in range(W):
            win = wout + dw - 1
            if 0 <= win < W:
                P[dw, win, wout] = 1.0
    bw = jnp.einsum('dnw,hdio->hniwo', jnp.asarray(P), w_scaled)
    return bw.reshape(3, W * Cin, W * Cout)


def conv3x3_bn(x, w, scale, bias, residual=None, apply_relu=False,
               out_dtype=jnp.float32):
    """x: (N, H, W, Cin); w: (3, 3, Cin, Cout) f32; scale/bias: (Cout,) f32."""
    N, H, W, Cin = x.shape
    Cout = w.shape[-1]
    cdt = COMPUTE_DTYPE

    bw = _banded_weights(w * scale, W).astype(cdt)     # BN scale folded in
    bias_t = jnp.tile(bias, W).reshape(1, W * Cout).astype(jnp.float32)
    x2 = x.reshape(N, H, W * Cin)                      # free row-major view

    in_specs = [
        pl.BlockSpec((None, H, W * Cin), lambda n: (n, 0, 0)),
        pl.BlockSpec((3, W * Cin, W * Cout), lambda n: (0, 0, 0)),
        pl.BlockSpec((1, W * Cout), lambda n: (0, 0)),
    ]
    args = [x2, bw, bias_t]
    fuse_residual = residual is not None
    if fuse_residual:
        in_specs.append(pl.BlockSpec((None, H, W * Cout), lambda n: (n, 0, 0)))
        args.append(residual.reshape(N, H, W * Cout))  # f32, no wrapper cast

    blk_bytes = (_padded_bytes((H, W * Cin), x.dtype)
                 + _padded_bytes((3, W * Cin, W * Cout), cdt)
                 + _padded_bytes((1, W * Cout), jnp.float32)
                 + _padded_bytes((H, W * Cout), out_dtype))
    if fuse_residual:
        blk_bytes += _padded_bytes((H, W * Cout), residual.dtype)
    scratch_bytes = _padded_bytes((H + 2, W * Cin), cdt)

    kernel = functools.partial(_conv3x3_bn_kernel, apply_relu=apply_relu,
                               fuse_residual=fuse_residual)
    out = pl.pallas_call(
        kernel,
        out_shape=jax.ShapeDtypeStruct((N, H, W * Cout), out_dtype),
        grid=(N,),
        in_specs=in_specs,
        out_specs=pl.BlockSpec((None, H, W * Cout), lambda n: (n, 0, 0)),
        scratch_shapes=[pltpu.VMEM((H + 2, W * Cin), cdt)],
        compiler_params=pltpu.CompilerParams(
            dimension_semantics=("parallel",),
            vmem_limit_bytes=_vmem_limit(blk_bytes, scratch_bytes)),
    )(*args)
    return out.reshape(N, H, W, Cout)                  # free reshape


# ---------------------------------------------------------------------------
# Kernel 2: fused [nearest-upsample -> 3x3 conv -> BN] on two inputs + add + ReLU
# (stride != 1 branch: conv1(up(out)) + shortcut(up(x)); upsample, padding and
#  BN are all folded into per-parity banded weights; the two low-res inputs are
#  channel-concatenated along K so each parity is a 2-dot chain.)
# ---------------------------------------------------------------------------
def _upconv_dual_kernel(a_ref, b_ref, w_ref, bias_ref, o_ref, cv, *, stride):
    # a_ref, b_ref: (H, W*Cin)                 low-res inputs (bf16 / f32)
    # w_ref:        (s, 2, 2*W*Cin, W*s*Cout)  banded parity weights (bf16)
    # bias_ref:     (1, W*s*Cout)              combined folded BN bias (f32)
    # o_ref:        (H, s*W*s*Cout)            lane-dense output slab (f32)
    # cv:           (H+2, 2*W*Cin)             scratch: [a | b] with vertical halo
    s = stride
    H, WCin = a_ref.shape
    ncol = o_ref.shape[1] // s                          # = W * s * Cout

    zrow = jnp.zeros((1, 2 * WCin), cv.dtype)
    cv[0:1, :] = zrow
    cv[H + 1:H + 2, :] = zrow
    cv[1:H + 1, 0:WCin] = a_ref[...].astype(cv.dtype)
    cv[1:H + 1, WCin:2 * WCin] = b_ref[...].astype(cv.dtype)
    bias = bias_ref[...]

    for r in range(s):                                  # output row parity
        br = 0 if r == 0 else 1
        acc = jnp.dot(cv[br:br + H, :], w_ref[r, 0],
                      preferred_element_type=jnp.float32)
        acc = acc + jnp.dot(cv[br + 1:br + 1 + H, :], w_ref[r, 1],
                            preferred_element_type=jnp.float32)
        out_r = jnp.maximum(acc + bias, 0.0)
        # direct per-parity store (bounds live ranges; lane offset r*ncol)
        o_ref[:, r * ncol:(r + 1) * ncol] = out_r.astype(o_ref.dtype)


def _parity_matrix(s):
    """m[p, a, dh]: which 3x3 row-taps collapse onto low-res tap a for parity p."""
    m = np.zeros((s, 2, 3), np.float32)
    for p in range(s):
        if p == 0:
            m[p, 0] = (1, 0, 0)
            m[p, 1] = (0, 1, 1)
        elif p == s - 1:
            m[p, 0] = (1, 1, 0)
            m[p, 1] = (0, 0, 1)
        else:
            m[p, 0] = (1, 1, 1)
    return m


def _upsample_banded_weights(w_scaled, W, s):
    """Fold nearest x`s` upsample + 3x3/pad-1 conv + horizontal zero padding
    into per-(row-parity, row-tap) banded matrices: (s, 2, W*Cin, W*s*Cout)."""
    _, _, Cin, Cout = w_scaled.shape
    m = jnp.asarray(_parity_matrix(s))
    Q = np.zeros((s, 2, W, W), np.float32)              # Q[c, b, win, wout]
    for c in range(s):
        bc = 0 if c == 0 else 1
        for b in range(2):
            for wout in range(W):
                win = wout + bc + b - 1
                if 0 <= win < W:
                    Q[c, b, win, wout] = 1.0
    # e[r, c, a, b, i, o]: effective 2x2 weights per output parity (r, c)
    e = jnp.einsum('rah,cbw,hwio->rcabio', m, m, w_scaled)
    pw = jnp.einsum('cbnw,rcabio->raniwco', jnp.asarray(Q), e)
    return pw.reshape(s, 2, W * Cin, W * s * Cout)


def upsample_dual_conv3x3_bn_relu(a, b, wa, sa, ba, wb, sb, bb, stride):
    """relu( BNa(conv3x3(up_s(a), wa)) + BNb(conv3x3(up_s(b), wb)) ).
    The upsampled tensors are never materialised in HBM."""
    N, H, W, Cin = a.shape
    Cout = wa.shape[-1]
    s = stride
    cdt = COMPUTE_DTYPE

    pwa = _upsample_banded_weights(wa * sa, W, s)       # BN scale folded in
    pwb = _upsample_banded_weights(wb * sb, W, s)
    pw = jnp.concatenate([pwa, pwb], axis=2).astype(cdt)   # (s,2,2*W*Cin,W*s*Cout)
    bias_t = jnp.tile(ba + bb, W * s).reshape(1, W * s * Cout).astype(jnp.float32)
    a2 = a.reshape(N, H, W * Cin)
    b2 = b.reshape(N, H, W * Cin)

    blk_bytes = (_padded_bytes((H, W * Cin), a.dtype)
                 + _padded_bytes((H, W * Cin), b.dtype)
                 + _padded_bytes((s, 2, 2 * W * Cin, W * s * Cout), cdt)
                 + _padded_bytes((1, W * s * Cout), jnp.float32)
                 + _padded_bytes((H, s * W * s * Cout), jnp.float32))
    scratch_bytes = _padded_bytes((H + 2, 2 * W * Cin), cdt)

    out = pl.pallas_call(
        functools.partial(_upconv_dual_kernel, stride=s),
        out_shape=jax.ShapeDtypeStruct((N, H, s * W * s * Cout), jnp.float32),
        grid=(N,),
        in_specs=[
            pl.BlockSpec((None, H, W * Cin), lambda n: (n, 0, 0)),
            pl.BlockSpec((None, H, W * Cin), lambda n: (n, 0, 0)),
            pl.BlockSpec((s, 2, 2 * W * Cin, W * s * Cout),
                         lambda n: (0, 0, 0, 0)),
            pl.BlockSpec((1, W * s * Cout), lambda n: (0, 0)),
        ],
        out_specs=pl.BlockSpec((None, H, s * W * s * Cout), lambda n: (n, 0, 0)),
        scratch_shapes=[pltpu.VMEM((H + 2, 2 * W * Cin), cdt)],
        compiler_params=pltpu.CompilerParams(
            dimension_semantics=("parallel",),
            vmem_limit_bytes=_vmem_limit(blk_bytes, scratch_bytes)),
    )(a2, b2, pw, bias_t)
    # (N, H, s*W*s*Cout) == (N, H, s, W*s, Cout) row-major -> free reshape.
    return out.reshape(N, H * s, W * s, Cout)


# ---------------------------------------------------------------------------
# BasicBlockDec forward (wrapper / glue)
# ---------------------------------------------------------------------------
def _fold_bn(gamma, beta, mean, var, conv_bias=None):
    scale = gamma / jnp.sqrt(var + EPS)
    b = conv_bias if conv_bias is not None else 0.0
    bias = beta + scale * (b - mean)
    return scale, bias


def basic_block_dec_forward(x_nhwc, p, stride):
    # out = relu(bn2(conv2(x)))  — intermediate kept in bf16 (halves HBM)
    s2, b2 = _fold_bn(p['bn2_g'], p['bn2_b'], p['bn2_m'], p['bn2_v'])
    out = conv3x3_bn(x_nhwc, p['w2'], s2, b2, apply_relu=True,
                     out_dtype=COMPUTE_DTYPE)

    if stride == 1:
        # out = relu(bn1(conv1(out)) + x)
        s1, b1 = _fold_bn(p['bn1_g'], p['bn1_b'], p['bn1_m'], p['bn1_v'])
        out = conv3x3_bn(out, p['w1'], s1, b1, residual=x_nhwc, apply_relu=True)
    else:
        # out = relu(bn1(conv1(up(out))) + bnsc(convsc(up(x)))) — fully fused
        s1, b1 = _fold_bn(p['bn1_g'], p['bn1_b'], p['bn1_m'], p['bn1_v'],
                          p['w1_b'])
        ssc, bsc = _fold_bn(p['bnsc_g'], p['bnsc_b'], p['bnsc_m'], p['bnsc_v'],
                            p['wsc_b'])
        out = upsample_dual_conv3x3_bn_relu(out, x_nhwc, p['w1'], s1, b1,
                                            p['wsc'], ssc, bsc, stride)
    return out


# ---------------------------------------------------------------------------
# Pure-JAX reference (for correctness check)
# ---------------------------------------------------------------------------
def _ref_conv3x3(x, w, b=None):
    out = lax.conv_general_dilated(
        x, w, window_strides=(1, 1), padding=((1, 1), (1, 1)),
        dimension_numbers=("NHWC", "HWIO", "NHWC"),
        precision=lax.Precision.HIGHEST)
    if b is not None:
        out = out + b
    return out


def _ref_bn(x, g, b, m, v):
    return g * (x - m) / jnp.sqrt(v + EPS) + b


def basic_block_dec_reference(x, p, stride):
    out = jax.nn.relu(_ref_bn(_ref_conv3x3(x, p['w2']),
                              p['bn2_g'], p['bn2_b'], p['bn2_m'], p['bn2_v']))
    if stride == 1:
        out = _ref_bn(_ref_conv3x3(out, p['w1']),
                      p['bn1_g'], p['bn1_b'], p['bn1_m'], p['bn1_v'])
        out = out + x
    else:
        out_up = jnp.repeat(jnp.repeat(out, stride, axis=1), stride, axis=2)
        x_up = jnp.repeat(jnp.repeat(x, stride, axis=1), stride, axis=2)
        out = _ref_bn(_ref_conv3x3(out_up, p['w1'], p['w1_b']),
                      p['bn1_g'], p['bn1_b'], p['bn1_m'], p['bn1_v'])
        sc = _ref_bn(_ref_conv3x3(x_up, p['wsc'], p['wsc_b']),
                     p['bnsc_g'], p['bnsc_b'], p['bnsc_m'], p['bnsc_v'])
        out = out + sc
    return jax.nn.relu(out)


# ---------------------------------------------------------------------------
# Deterministic parameter init (shapes from BasicBlockDec.__init__)
# ---------------------------------------------------------------------------
def init_params(key, in_planes, stride):
    planes = in_planes // stride
    ks = jax.random.split(key, 8)

    def conv_w(k, cin, cout):
        return jax.random.normal(k, (3, 3, cin, cout), jnp.float32) / jnp.sqrt(9.0 * cin)

    def bn_params(k, c, tag):
        k1, k2, k3, k4 = jax.random.split(k, 4)
        return {f'{tag}_g': 1.0 + 0.1 * jax.random.normal(k1, (c,), jnp.float32),
                f'{tag}_b': 0.1 * jax.random.normal(k2, (c,), jnp.float32),
                f'{tag}_m': 0.1 * jax.random.normal(k3, (c,), jnp.float32),
                f'{tag}_v': 0.5 + jnp.abs(jax.random.normal(k4, (c,), jnp.float32))}

    p = {'w2': conv_w(ks[0], in_planes, in_planes)}          # conv2, bias=False
    p.update(bn_params(ks[1], in_planes, 'bn2'))
    p['w1'] = conv_w(ks[2], in_planes, planes)                # conv1
    p.update(bn_params(ks[3], planes, 'bn1'))
    if stride != 1:
        p['w1_b'] = 0.1 * jax.random.normal(ks[4], (planes,), jnp.float32)
        p['wsc'] = conv_w(ks[5], in_planes, planes)           # shortcut ResizeConv2d
        p['wsc_b'] = 0.1 * jax.random.normal(ks[6], (planes,), jnp.float32)
        p.update(bn_params(ks[7], planes, 'bnsc'))
    return p


if __name__ == "__main__":
    key = jax.random.PRNGKey(0)
    kx, kp1, kp2 = jax.random.split(key, 3)

    N, C, H, W = 2, 4, 16, 16
    x_nchw = jax.random.normal(kx, (N, C, H, W), jnp.float32)   # PyTorch layout
    x_nhwc = jnp.transpose(x_nchw, (0, 2, 3, 1))                # kernel layout

    for stride, kp in ((1, kp1), (2, kp2)):
        params = init_params(kp, C, stride)
        out = jax.block_until_ready(
            basic_block_dec_forward(x_nhwc, params, stride))

        ref = basic_block_dec_reference(x_nhwc, params, stride)
        assert out.shape == ref.shape, (out.shape, ref.shape)
        err = float(jnp.max(jnp.abs(out - ref)))
        # bf16 matmul operands (f32 accumulation/epilogue) -> ~1e-2 scale error
        assert jnp.allclose(out, ref, atol=5e-2, rtol=5e-2), (
            f"stride={stride} mismatch, max abs err {err}")

    print("KERNEL_OK")
</pallas_src>

<mosaic_0001>
module attributes {stable_mosaic.version = 11 : i64} {
  func.func @_conv3x3_bn_kernel(%arg0: i32, %arg1: memref<1x16x64xf32, #tpu.memory_space<vmem>>, %arg2: memref<3x64x64xbf16, #tpu.memory_space<vmem>>, %arg3: memref<1x64xf32, #tpu.memory_space<vmem>>, %arg4: memref<1x16x64xbf16, #tpu.memory_space<vmem>>, %arg5: memref<18x64xbf16, #tpu.memory_space<vmem>>) attributes {dimension_semantics = [#tpu.dimension_semantics<parallel>], iteration_bounds = array<i64: 2>, scalar_prefetch = 0 : i64, scratch_operands = 1 : i64, tpu.core_type = #tpu.core_type<tc>, window_params = [{transform_indices = @transform_0, window_bounds = array<i64: 1, 16, 64>}, {pipeline_mode = #tpu.pipeline_mode<synchronous>, transform_indices = @transform_1, window_bounds = array<i64: 3, 64, 64>}, {pipeline_mode = #tpu.pipeline_mode<synchronous>, transform_indices = @transform_2, window_bounds = array<i64: 1, 64>}, {transform_indices = @transform_3, window_bounds = array<i64: 1, 16, 64>}]} {
    %cst = arith.constant 0.000000e+00 : bf16
    %0 = vector.broadcast %cst : bf16 to vector<1x64xbf16>
    %c0 = arith.constant 0 : index
    %c0_0 = arith.constant 0 : index
    %1 = vector.load %arg5[%c0, %c0_0] : memref<18x64xbf16, #tpu.memory_space<vmem>>, vector<1x64xbf16>
    tpu.vector_store %arg5[%c0, %c0_0], %0 {strides = array<i32>} : memref<18x64xbf16, #tpu.memory_space<vmem>>, vector<1x64xbf16>,
    %c17 = arith.constant 17 : index
    %c0_1 = arith.constant 0 : index
    %2 = vector.load %arg5[%c17, %c0_1] : memref<18x64xbf16, #tpu.memory_space<vmem>>, vector<1x64xbf16>
    tpu.vector_store %arg5[%c17, %c0_1], %0 {strides = array<i32>} : memref<18x64xbf16, #tpu.memory_space<vmem>>, vector<1x64xbf16>,
    %c0_2 = arith.constant 0 : index
    %c0_3 = arith.constant 0 : index
    %c0_4 = arith.constant 0 : index
    %3 = vector.load %arg1[%c0_2, %c0_3, %c0_4] : memref<1x16x64xf32, #tpu.memory_space<vmem>>, vector<1x16x64xf32>
    %4 = vector.shape_cast %3 : vector<1x16x64xf32> to vector<16x64xf32>
    %5 = arith.truncf %4 : vector<16x64xf32> to vector<16x64xbf16>
    %c1 = arith.constant 1 : index
    %c0_5 = arith.constant 0 : index
    %6 = vector.load %arg5[%c1, %c0_5] : memref<18x64xbf16, #tpu.memory_space<vmem>>, vector<16x64xbf16>
    tpu.vector_store %arg5[%c1, %c0_5], %5 {strides = array<i32>} : memref<18x64xbf16, #tpu.memory_space<vmem>>, vector<16x64xbf16>,
    %c1_6 = arith.constant 1 : index
    %c0_7 = arith.constant 0 : index
    %7 = vector.load %arg5[%c1_6, %c0_7] : memref<18x64xbf16, #tpu.memory_space<vmem>>, vector<16x64xbf16>
    %c1_8 = arith.constant 1 : index
    %c0_9 = arith.constant 0 : index
    %c0_10 = arith.constant 0 : index
    %8 = vector.load %arg2[%c1_8, %c0_9, %c0_10] : memref<3x64x64xbf16, #tpu.memory_space<vmem>>, vector<1x64x64xbf16>
    %9 = vector.shape_cast %8 : vector<1x64x64xbf16> to vector<64x64xbf16>
    %cst_11 = arith.constant dense<0.000000e+00> : vector<16x64xf32>
    %10 = tpu.matmul %7, %9, %cst_11 {dimension_numbers = #tpu.dot_dimension_numbers<[1], [0], [0], [1], [0, 0, 1, 1], [], []>} : vector<16x64xbf16>, vector<64x64xbf16>, vector<16x64xf32> -> vector<16x64xf32>
    %c0_12 = arith.constant 0 : index
    %c0_13 = arith.constant 0 : index
    %11 = vector.load %arg5[%c0_12, %c0_13] : memref<18x64xbf16, #tpu.memory_space<vmem>>, vector<16x64xbf16>
    %c0_14 = arith.constant 0 : index
    %c0_15 = arith.constant 0 : index
    %c0_16 = arith.constant 0 : index
    %12 = vector.load %arg2[%c0_14, %c0_15, %c0_16] : memref<3x64x64xbf16, #tpu.memory_space<vmem>>, vector<1x64x64xbf16>
    %13 = vector.shape_cast %12 : vector<1x64x64xbf16> to vector<64x64xbf16>
    %cst_17 = arith.constant dense<0.000000e+00> : vector<16x64xf32>
    %14 = tpu.matmul %11, %13, %cst_17 {dimension_numbers = #tpu.dot_dimension_numbers<[1], [0], [0], [1], [0, 0, 1, 1], [], []>} : vector<16x64xbf16>, vector<64x64xbf16>, vector<16x64xf32> -> vector<16x64xf32>
    %15 = arith.addf %10, %14 : vector<16x64xf32>
    %c2 = arith.constant 2 : index
    %c0_18 = arith.constant 0 : index
    %16 = vector.load %arg5[%c2, %c0_18] : memref<18x64xbf16, #tpu.memory_space<vmem>>, vector<16x64xbf16>
    %c2_19 = arith.constant 2 : index
    %c0_20 = arith.constant 0 : index
    %c0_21 = arith.constant 0 : index
    %17 = vector.load %arg2[%c2_19, %c0_20, %c0_21] : memref<3x64x64xbf16, #tpu.memory_space<vmem>>, vector<1x64x64xbf16>
    %18 = vector.shape_cast %17 : vector<1x64x64xbf16> to vector<64x64xbf16>
    %cst_22 = arith.constant dense<0.000000e+00> : vector<16x64xf32>
    %19 = tpu.matmul %16, %18, %cst_22 {dimension_numbers = #tpu.dot_dimension_numbers<[1], [0], [0], [1], [0, 0, 1, 1], [], []>} : vector<16x64xbf16>, vector<64x64xbf16>, vector<16x64xf32> -> vector<16x64xf32>
    %20 = arith.addf %15, %19 : vector<16x64xf32>
    %c0_23 = arith.constant 0 : index
    %c0_24 = arith.constant 0 : index
    %21 = vector.load %arg3[%c0_23, %c0_24] : memref<1x64xf32, #tpu.memory_space<vmem>>, vector<1x64xf32>
    %22 = vector.broadcast %21 : vector<1x64xf32> to vector<16x64xf32>
    %23 = arith.addf %20, %22 : vector<16x64xf32>
    %cst_25 = arith.constant 0.000000e+00 : f32
    %24 = vector.broadcast %cst_25 : f32 to vector<16x64xf32>
    %25 = arith.maximumf %23, %24 : vector<16x64xf32>
    %26 = arith.truncf %25 : vector<16x64xf32> to vector<16x64xbf16>
    %c0_26 = arith.constant 0 : index
    %c0_27 = arith.constant 0 : index
    %c0_28 = arith.constant 0 : index
    %27 = vector.load %arg4[%c0_26, %c0_27, %c0_28] : memref<1x16x64xbf16, #tpu.memory_space<vmem>>, vector<1x16x64xbf16>
    %28 = vector.shape_cast %27 : vector<1x16x64xbf16> to vector<16x64xbf16>
    %29 = vector.shape_cast %26 : vector<16x64xbf16> to vector<1x16x64xbf16>
    tpu.vector_store %arg4[%c0_26, %c0_27, %c0_28], %29 {strides = array<i32>} : memref<1x16x64xbf16, #tpu.memory_space<vmem>>, vector<1x16x64xbf16>,
    return
  }
  func.func @transform_0(%arg0: i32) -> (i32, i32, i32) {
    %c0_i32 = arith.constant 0 : i32
    %c0_i32_0 = arith.constant 0 : i32
    %c0_i32_1 = arith.constant 0 : i32
    return %arg0, %c0_i32, %c0_i32_0 : i32, i32, i32
  }
  func.func @transform_1(%arg0: i32) -> (i32, i32, i32) {
    %c0_i32 = arith.constant 0 : i32
    %c0_i32_0 = arith.constant 0 : i32
    %c0_i32_1 = arith.constant 0 : i32
    %c0_i32_2 = arith.constant 0 : i32
    return %c0_i32, %c0_i32_0, %c0_i32_1 : i32, i32, i32
  }
  func.func @transform_2(%arg0: i32) -> (i32, i32) {
    %c0_i32 = arith.constant 0 : i32
    %c0_i32_0 = arith.constant 0 : i32
    %c0_i32_1 = arith.constant 0 : i32
    return %c0_i32, %c0_i32_0 : i32, i32
  }
  func.func @transform_3(%arg0: i32) -> (i32, i32, i32) {
    %c0_i32 = arith.constant 0 : i32
    %c0_i32_0 = arith.constant 0 : i32
    %c0_i32_1 = arith.constant 0 : i32
    return %arg0, %c0_i32, %c0_i32_0 : i32, i32, i32
  }
}

</mosaic_0001>

<bundles_post_ra>
// kernel: tpu_custom_call.1
= control target key start
LH: loop header
LB: loop body
LE: loop exit
PB: predicated region body
PF: predicated region fallthrough
CT: control target
= control target key end

     0   :  { %8 = vsyncpa [#allocation4], 0  ;;  %s1237_s0 = inlined_call_operand.hbm [shape: f32[2,16,64], index: 0, kind: input, shape index: {}]   ;;  %s1238_s1 = inlined_call_operand.hbm [shape: bf16[3,64,64], index: 1, kind: input, shape index: {}]   ;;  %s1239_s2 = inlined_call_operand.vmem [shape: f32[1,64], index: 2, kind: input, shape index: {}]   ;;  %s1240_s3 = inlined_call_operand.hbm [shape: bf16[2,16,64], index: 3, kind: output, shape index: {}]  }
   0x1   :  { %10 = vsyncpa [#allocation4 + $0x1], 0 }
   0x2   :  { %11 = vsyncpa [#allocation7], 0 }
   0x3   :  { %12 = vsyncpa [#allocation5], 0 }
   0x4   :  { %14 = vsyncpa [#allocation5 + $0x1], 0  ;;  %s975_s12 = smov 0   ;;  %s977_s13 = smov 0  }
   0x5   :  { %s979_s14 = smov 0   ;;  %s981_s15 = smov 0  }
   0x6 LB: > { %s996_s16 = sadd.s32 4294967295, %s942_s15   ;;  %s638_s17 = sadd.s32 4294967294, %s942_s15   ;;  %s942_s15 = sphi %s981_s15, %s1268_s15   ;;  %s938_s14 = sphi %s979_s14, %s1267_s14   ;;  %s934_s13 = sphi %s977_s13, %s1266_s13   ;;  %s930_s12 = sphi %s975_s12, %s1265_s12  }
   0x7   : > { %p40_p0 = scmp.ne.s32.totalorder %s934_s13, %s930_s12  ;;  %p1241_p1 = scmp.eq.s32.totalorder %s996_s16, 0 }
   0x8   : > { %p112_p3 = scmp.eq.s32.totalorder %s638_s17, 1  ;;  %p639_p5 = scmp.ge.s32.totalorder %s942_s15, 1 }
   0x9   : > { %p1005_p4 = por %p1241_p1, %p40_p0  ;;  %p119_p7 = scmp.lt.s32.totalorder %s942_s15, 3 }
   0xa   : > { %p1010_p6 = por %p112_p3, %p40_p0  ;;  %s944_s21 = smov [#allocation6]  }
   0xb   : > { %s1244_s18 = scalar_select %p1005_p4, 1, 0 }
   0xc   : > { %s1245_s19 = scalar_select %p1010_p6, 1, 0 }
   0xd   : > { %p1015_p8 = pnand %p639_p5, %p119_p7  ;;  %s131_s22 = sshll.u32 %s944_s21, 4  ;;  %s1019_s22 = int_to_ptr.vmem [resolvable:$true] %s131_s22 }
   0xe   : > { %s1031_s24 = sadd.s32 1, %s942_s15   ;;  %s27_s25 = sadd.s32 1, %s938_s14 }
   0xf   : > { %s1246_s20 = scalar_select %p1015_p8, 1, 0 }
  0x10   : > { %p742_p9 = pneg %p1015_p8  ;;  %s24_s26 = ssub.s32 %s942_s15, %s1031_s24 }
  0x11   : > { %s814_s29 = scalar_lea.hbm %s1238_s1, 1536 }
  0x12   : > { %p1026_p11 = pnand %p742_p9, %p1241_p1  ;;  %p815_p12 = scmp.ne.s32.totalorder %s1238_s1, %s814_s29 }
  0x13   : > { %p821_p5 = scmp.lt.u32.totalorder %s814_s29, %s1238_s1 }
  0x14   : > { %p816_p13 = pneg %p1026_p11 }
  0x16   : > { %p817_p0 = pnand %p816_p13, %p815_p12 }
  0x18   : > { %p818_p3 = pneg %p817_p0 }
  0x1a   : > { %p823_p7 = pnand %p821_p5, %p818_p3 }
  0x1c   : > { %826 = shalt.err (!%p823_p7)
}
  0x1d   : > { %s827_s7 = scalar_lea.vmem %s1019_s22, 1536  ;;  %p835_p2 = scmp.lt.s32.totalorder %s1019_s22, %s1019_s22 }
  0x1e   : > { %p828_p9 = scmp.ne.s32.totalorder %s1019_s22, %s827_s7  ;;  %p836_p6 = scmp.lt.s32.totalorder %s827_s7, %s827_s7 }
  0x20   : > { %p830_p10 = pnand %p828_p9, %p816_p13  ;;  %p837_p4 = por %p836_p6, %p835_p2 }
  0x22   : > { %p831_p1 = pneg %p830_p10 }
  0x24   : > { %p838_p8 = pnand %p837_p4, %p831_p1 }
  0x26   : > { %841 = shalt.err (!%p838_p8)
}
  0x27   : > { %s945_s8 = smov 64   ;;  %s946_s9 = smov 4  }
  0x28   : > { %745 = dma.hbm_to_vmem [thread:$0]  (!%p1026_p11), %s1238_s1, 1536, %s1019_s22, [#allocation7], %s945_s8, %s945_s8, %s946_s9  }
  0x29   : > { %p25_p2 = scmp.eq.s32.totalorder %s24_s26, 0  ;;  %p34_p1 = scmp.ne.s32.totalorder %s938_s14, %s934_s13 }
  0x2a   : > { %p35_p4 = scmp.eq.s32.totalorder %s942_s15, 0  ;;  %p755_p6 = scmp.lt.s32.totalorder %s942_s15, 2 }
  0x2b   : > { %s1062_s17 = scalar_select %p25_p2, %s938_s14, %s27_s25  }
  0x2c   : > { %p36_p8 = por %p35_p4, %p34_p1  ;;  %p1248_p10 = scmp.eq.s32.totalorder %s996_s16, 1 }
  0x2d   : > { %s148_s27 = sand.u32 1, %s938_s14   ;;  %s677_s28 = sshll.u32 %s942_s15, 8 }
  0x2e   : > { %p1066_p12 = por %p1248_p10, %p34_p1  ;;  %s642_s29 = sshll.u32 %s148_s27, 4 }
  0x2f   : > { %s1075_s4 = scalar_lea.hbm %s1237_s0, %s677_s28  ;;  %s152_s22 = scalar_lea.vmem [#allocation3], %s642_s29 }
  0x30   : > { %s159_s25 = sshll.u32 %s152_s22, 4  ;;  %p1077_p11 = pnand %p755_p6, %p36_p8  ;;  %s1081_s25 = int_to_ptr.vmem [resolvable:$true] %s159_s25 }
  0x31   : > { %s1083_s5 = scalar_lea.sflag [#allocation4], %s148_s27  ;;  %s842_s6 = scalar_lea.hbm %s1075_s4, 256 }
  0x32   : > { %p843_p13 = scmp.ne.s32.totalorder %s1075_s4, %s842_s6  ;;  %p844_p0 = pneg %p1077_p11 }
  0x33   : > { %s847_s9 = scalar_lea.hbm %s1237_s0, 512  ;;  %p848_p7 = scmp.lt.u32.totalorder %s1075_s4, %s1237_s0 }
  0x34   : > { %p845_p3 = pnand %p844_p0, %p843_p13  ;;  %p849_p9 = scmp.lt.u32.totalorder %s847_s9, %s842_s6 }
  0x35   : > { %p851_p1 = scmp.lt.u32.totalorder %s842_s6, %s1075_s4 }
  0x36   : > { %p846_p5 = pneg %p845_p3  ;;  %p850_p2 = por %p849_p9, %p848_p7 }
  0x38   : > { %p852_p4 = por %p851_p1, %p850_p2 }
  0x3a   : > { %p853_p6 = pnand %p852_p4, %p846_p5 }
  0x3c   : > { %856 = shalt.err (!%p853_p6)
}
  0x3d   : > { %s857_s27 = scalar_lea.vmem %s1081_s25, 256  ;;  %s947_s28 = smov [#allocation3]  }
  0x3e   : > { %p858_p8 = scmp.ne.s32.totalorder %s1081_s25, %s857_s27  ;;  %s862_s29 = sshll.u32 %s947_s28, 4  ;;  %s863_s29 = int_to_ptr.vmem [resolvable:$false] %s862_s29 }
  0x3f   : > { %s864_s23 = scalar_lea.vmem %s863_s29, 512  ;;  %p865_p3 = scmp.lt.s32.totalorder %s1081_s25, %s863_s29 }
  0x40   : > { %p860_p10 = pnand %p858_p8, %p844_p0  ;;  %p866_p7 = scmp.lt.s32.totalorder %s864_s23, %s857_s27 }
  0x42   : > { %p861_p13 = pneg %p860_p10  ;;  %p867_p9 = por %p866_p7, %p865_p3 }
  0x44   : > { %p868_p2 = pnand %p867_p9, %p861_p13 }
  0x46   : > { %871 = shalt.err (!%p868_p2)
}
  0x47   : > { %s948_s30 = smov 128   ;;  %s949_s22 = smov 8  }
  0x48   : > { %749 = dma.hbm_to_vmem [thread:$0]  (!%p1077_p11), %s1075_s4, 256, %s1081_s25, %s1083_s5, %s948_s30, %s948_s30, %s949_s22  }
  0x49   : > { %p1251_p0 = scmp.ne.s32.totalorder %s1246_s20, 0 }
  0x4a   : > { %s1114_s6 = sand.u32 (!%p1251_p0), 1, %s934_s13   ;;  %p1252_p5 = scmp.ne.s32.totalorder (!%p1251_p0), %s1244_s18, 0 }
  0x4b   : > { %171 = sbr.rel (%p1251_p0) target bundleno = 363 (0x16b), region = 32  ;;  %s646_s7 = sshll.u32 (!%p1251_p0), %s1114_s6, 4 }
  0x4c   : > { %s174_s8 = scalar_lea.sflag (!%p1251_p0), [#allocation4], %s1114_s6  ;;  %s177_s9 = scalar_lea.vmem (!%p1251_p0), [#allocation3], %s646_s7 }
  0x52   : > { %917 = dma.done.wait (%p1252_p5), %s174_s8, 256  }
  0x53   : > { %919 = vsyncadd (%p1252_p5), %s174_s8, 4294967040  ;;  %p1253_p1 = scmp.eq.s32.totalorder %s996_s16, 0 }
  0x55   : > { %921 = dma.done.wait (%p1253_p1), [#allocation7], 1536   ;;  %p1254_p11 = pmov %p1253_p1 }
  0x56   : > { %v950_v0 = vmov 0.0   ;;  %vm951_vm0 = vmmov 0   ;;  %vm205_vm1 = vcmask 516096   ;;  %vm206_vm2 = vsmask.f32 256  ;;  %v799_v1 = vld [vmem:[#allocation6] sm:$0xff]  }
  0x57   : > { %923 = vsyncadd (%p1254_p11), [#allocation7], 4294965760  ;;  %698 = vmatprep.subr.bf16.mxu0 %v950_v0  ;;  %710 = vmatprep.subr.bf16.mxu1 %v950_v0  ;;  %vm211_vm4 = vsmask.f32 7938  ;;  %v800_v3 = vld [vmem:[#allocation6 + $0x8] sm:$0xff]   ;;  %v802_v4 = vld [vmem:[#allocation6 + $0x20] sm:$0xff]  }
  0x58   : > { %706 = vmatprep.mubr.msk.bf16.mxu0 %vm951_vm0, %v950_v0  ;;  %718 = vmatprep.mubr.msk.bf16.mxu1 %vm951_vm0, %v950_v0  ;;  %vm1134_vm3 = vmand %vm205_vm1, %vm206_vm2  ;;  %v801_v5 = vld [vmem:[#allocation6 + $0x10] sm:$0xff]   ;;  %v804_v6 = vld [vmem:[#allocation6 + $0x28] sm:$0xff]   ;;  %vm224_vm5 = vsmask.f32 4368  ;;  %vm246_vm7 = vcmask 519168   ;;  %vm305_vm10 = vcmask 523264  }
  0x59   : > { %699 = vmatpush3.bf16.msra.mxu0 %v799_v1  ;;  %711 = vmatpush3.bf16.msra.mxu1 %v802_v4  ;;  %v208_v7 = vld [vmem:[#allocation2] sm:$0x1]  ;;  %v217_v9 = vld [vmem:[%s177_s9 + $0x8] sm:$0xff]  ;;  %vm1145_vm6 = vmand %vm205_vm1, %vm211_vm4  ;;  %vm353_vm11 = vsmask.f32 7424  ;;  %vm446_vm12 = vcmask 1046528  }
  0x5a   : > { %700 = vmatprep.subr.bf16.mxu0 %v950_v0  ;;  %712 = vmatprep.subr.bf16.mxu1 %v950_v0  ;;  %v216_v8 = vld [vmem:[%s177_s9] sm:$0xff]  ;;  %v209_v10 = vsel %vm1134_vm3, 0, %v208_v7  ;;  %v679_v13 = vpack.c.bf16 %v217_v9, %v217_v9  ;;  %vm1150_vm8 = vmor %vm206_vm2, %vm224_vm5  ;;  %v803_v20 = vld [vmem:[#allocation6 + $0x18] sm:$0xff]   ;;  %s648_s18 = sshll.u32 %s1114_s6, 3  ;;  %s682_s25 = sshll.u32 %s996_s16, 7 }
  0x5b   : > { %v678_v12 = vpack.c.bf16 %v216_v8, %v216_v8  ;;  %210 = vst [vmem:[#allocation2] sm:$0x1] %v209_v10  ;;  %v807_v14 = vld [vmem:[#allocation6 + $0x30] sm:$0xff]   ;;  %vm1158_vm9 = vmand %vm246_vm7, %vm211_vm4  ;;  %v213_v24 = vld [vmem:[#allocation2 + $0x8] sm:$0x1]  ;;  %s203_s26 = scalar_lea.vmem [#allocation8], %s648_s18  ;;  %s1189_s27 = scalar_lea.hbm %s1240_s3, %s682_s25 }
  0x5c   : > { %v235_v18 = vshrl.u32 %v679_v13, 16  ;;  %v238_v19 = vshll.u32 %v679_v13, 16  ;;  %v809_v28 = vld [vmem:[#allocation6 + $0x38] sm:$0xff]   ;;  %v214_v29 = vsel %vm1145_vm6, 0, %v213_v24  ;;  %v808_v38 = vld [vmem:[#allocation6 + $0x40] sm:$0xff]   ;;  %v810_v41 = vld [vmem:[#allocation6 + $0x48] sm:$0xff]  }
  0x5d   : > { %701 = vmatpush3.bf16.msra.mxu0 %v800_v3  ;;  %713 = vmatpush3.bf16.msra.mxu1 %v804_v6  ;;  %v227_v16 = vshrl.u32 %v678_v12, 16  ;;  %v230_v17 = vshll.u32 %v678_v12, 16  ;;  %215 = vst [vmem:[#allocation2 + $0x8] sm:$0x1] %v214_v29  ;;  %v812_v47 = vld [vmem:[#allocation6 + $0x50] sm:$0xff]   ;;  %v813_v52 = vld [vmem:[#allocation6 + $0x58] sm:$0xff]  }
  0x5e   : > { %702 = vmatprep.subr.bf16.mxu0 %v950_v0  ;;  %714 = vmatprep.subr.bf16.mxu1 %v950_v0  ;;  %v237_v22 = vrot.slane %v235_v18, 7  ;;  %v669_v3 = vld [vmem:[%s1239_s2] ss:$0 sm:$0xff]  ;;  %s555_s5 = sshll.u32 %s203_s26, 4  ;;  %s542_s16 = scalar_lea.sflag [#allocation5], %s1114_s6  ;;  %s1191_s5 = int_to_ptr.vmem [resolvable:$true] %s555_s5 }
  0x5f   : > { %v229_v21 = vrot.slane %v227_v16, 7  ;;  %s872_s28 = scalar_lea.vmem %s1191_s5, 128  ;;  %s952_s29 = smov [#allocation8]  }
  0x60   : > { %v240_v27 = vor.u32 %v238_v19, %v237_v22  ;;  %v242_v33 = vrot.slane %v237_v22, 4  ;;  %p873_p4 = scmp.ne.s32.totalorder %s1191_s5, %s872_s28  ;;  %s876_s23 = sshll.u32 %s952_s29, 4  ;;  %s877_s23 = int_to_ptr.vmem [resolvable:$false] %s876_s23 }
  0x61   : > { %703 = vmatpush3.bf16.msra.mxu0 %v801_v5  ;;  %v232_v25 = vor.u32 %v230_v17, %v229_v21  ;;  %v233_v26 = vrot.slane %v229_v21, 4  ;;  %715 = vmatpush3.bf16.msra.mxu1 %v807_v14  ;;  %s878_s30 = scalar_lea.vmem %s877_s23, 256  ;;  %p879_p10 = scmp.lt.s32.totalorder %s1191_s5, %s877_s23 }
  0x62   : > { %704 = vmatprep.subr.bf16.mxu0 %v950_v0  ;;  %716 = vmatprep.subr.bf16.mxu1 %v950_v0  ;;  %v248_v31 = vld [vmem:[#allocation2] sm:$0xf]  ;;  %p874_p6 = pnand %p873_p4, %p1066_p12  ;;  %p880_p13 = scmp.lt.s32.totalorder %s878_s30, %s872_s28 }
  0x63   : > { %v241_v30 = vsel %vm1150_vm8, %v233_v26, %v240_v27  ;;  %v249_v32 = vsel %vm1158_vm9, %v232_v25, %v248_v31 }
  0x64   : > { %252 = vst.msk [vmem:[#allocation2 + $0x4] sm:$0xf] %vm246_vm7, %v241_v30  ;;  %250 = vst [vmem:[#allocation2] sm:$0xf] %v249_v32  ;;  %v253_v34 = vld [vmem:[#allocation2 + $0x8] sm:$0x1]  ;;  %p875_p8 = pneg %p874_p6  ;;  %p881_p3 = por %p880_p13, %p879_p10 }
  0x65   : > { %705 = vmatpush3.bf16.msra.mxu0 %v803_v20  ;;  %717 = vmatpush3.bf16.msra.mxu1 %v809_v28  ;;  %v254_v36 = vsel %vm1134_vm3, %v242_v33, %v253_v34 }
  0x66   : > { %722 = vmatprep.subr.bf16.mxu0 %v950_v0  ;;  %255 = vst [vmem:[#allocation2 + $0x8] sm:$0x1] %v254_v36  ;;  %p882_p7 = pnand %p881_p3, %p875_p8 }
  0x6b   : > { %v257_v35 = vld [vmem:[#allocation2 + $0x4] sm:$0xf]  ;;  %v256_v37 = vld [vmem:[#allocation2] sm:$0xf] }
  0x6c   : > { %v651_v39 = vcombine.low %v256_v37, %v257_v35  ;;  %v433_v42 = vld [vmem:[#allocation2] sm:$0xe] }
  0x6d   : > { %v811_v45 = vld [vmem:[#allocation2 + $0x8] ss:$0 sps:$4 sm:$0x11]   ;;  %v663_v46 = vcombine.low %v433_v42, %v257_v35 }
  0x6e   : > { %707 = vmatmul.mubr.msk.bf16.vlgmr.msra.gmra.mrb[0].mxu0 %vm305_vm10, %v651_v39  ;;  %v356_v40 = vshll.u32 %v651_v39, 16  ;;  %v354_v43 = vshrl.u32 %v651_v39, 16  ;;  %v361_v49 = vshll.u32 %v811_v45, 16  ;;  %v448_v53 = vrot.slane %v811_v45, 1 }
  0x6f   : > { %723 = vmatpush3.bf16.msra.mxu0 %v808_v38  ;;  %730 = vmatprep.mubr.msk.bf16.mxu0 %vm951_vm0, %v950_v0  ;;  %v447_v51 = vrot.slane %v663_v46, 1 }
  0x70   : > { %724 = vmatprep.subr.bf16.mxu0 %v950_v0  ;;  %v358_v44 = vrot.slane %v356_v40, 1  ;;  %v363_v50 = vrot.slane %v361_v49, 1 }
  0x71   : > { %v449_v55 = vsel %vm446_vm12, %v447_v51, %v448_v53 }
  0x72   : > { %v359_v48 = vor.u32 %v358_v44, %v354_v43 }
  0x73   : > { %725 = vmatpush3.bf16.msra.mxu0 %v810_v41 }
  0x74   : > { %726 = vmatprep.subr.bf16.mxu0 %v950_v0  ;;  %v364_v54 = vsel %vm353_vm11, %v359_v48, %v363_v50 }
  0x75   : > { %719 = vmatmul.mubr.msk.bf16.vlgmr.msra.gmra.mrb[0].mxu1 %vm305_vm10, %v364_v54 }
  0x77   : > { %727 = vmatpush3.bf16.msra.mxu0 %v812_v47 }
  0x78   : > { %728 = vmatprep.subr.bf16.mxu0 %v950_v0 }
  0x7b   : > { %729 = vmatpush3.bf16.msra.mxu0 %v813_v52 }
  0x7e   : > { %731 = vmatmul.mubr.msk.bf16.vlgmr.msra.gmra.mrb[4].mxu0 %vm305_vm10, %v449_v55 }
 0x141   : > { %v343_v56 = vpop.f32.mrb[0].mxu0 }
 0x142   : > { %v708_v57 = vpop.f32.mrb[1].mxu0 }
 0x143   : > { %v346_v58 = vpop.f32.mrb[2].mxu0 }
 0x144   : > { %v709_v59 = vpop.f32.mrb[3].mxu0 }
 0x148   : > { %v426_v60 = vpop.f32.mrb[0].mxu1 }
 0x149   : > { %v427_v61 = vadd.f32 %v426_v60, %v343_v56  ;;  %v720_v62 = vpop.f32.mrb[1].mxu1 }
 0x14a   : > { %v429_v63 = vpop.f32.mrb[2].mxu1 }
 0x14b   : > { %v430_v1 = vadd.f32 %v429_v63, %v346_v58  ;;  %v721_v2 = vpop.f32.mrb[3].mxu1 }
 0x151   : > { %v511_v0 = vpop.f32.mrb[4].mxu0 }
 0x152   : > { %v518_v4 = vadd.f32 %v511_v0, %v427_v61  ;;  %v732_v5 = vpop.f32.mrb[5].mxu0 }
 0x153   : > { %v514_v6 = vpop.f32.mrb[6].mxu0 }
 0x154   : > { %v527_v7 = vadd.f32 %v669_v3, %v518_v4  ;;  %v519_v8 = vadd.f32 %v514_v6, %v430_v1  ;;  %v733_v9 = vpop.f32.mrb[7].mxu0 }
 0x156   : > { %v529_v10 = vmax.f32 %v527_v7, 0.0  ;;  %v528_v11 = vadd.f32 %v669_v3, %v519_v8 }
 0x158   : > { %v680_v12 = vpack.c.bf16 %v529_v10, %v529_v10  ;;  %v530_v13 = vmax.f32 %v528_v11, 0.0 }
 0x15a   : > { %539 = vst.msk [vmem:[%s203_s26] sm:$0xf] %vm246_vm7, %v680_v12  ;;  %v681_v14 = vpack.c.bf16 %v530_v13, %v530_v13 }
 0x15c   : > { %540 = vst.msk [vmem:[%s203_s26 + $0x4] sm:$0xf] %vm246_vm7, %v681_v14 }
 0x15d   : > { %885 = shalt.err (!%p882_p7)
}
 0x15e   : > { %s886_s22 = scalar_lea.hbm %s1189_s27, 128  ;;  %s890_s9 = scalar_lea.hbm %s1240_s3, 256 }
 0x15f   : > { %p887_p9 = scmp.ne.s32.totalorder %s1189_s27, %s886_s22  ;;  %p891_p5 = scmp.lt.u32.totalorder %s1189_s27, %s1240_s3 }
 0x160   : > { %p892_p1 = scmp.lt.u32.totalorder %s890_s9, %s886_s22  ;;  %p894_p4 = scmp.lt.u32.totalorder %s886_s22, %s1189_s27 }
 0x161   : > { %p888_p2 = pnand %p887_p9, %p1066_p12 }
 0x162   : > { %p893_p11 = por %p892_p1, %p891_p5 }
 0x163   : > { %p889_p0 = pneg %p888_p2 }
 0x164   : > { %p895_p6 = por %p894_p4, %p893_p11 }
 0x166   : > { %p896_p8 = pnand %p895_p6, %p889_p0 }
 0x168   : > { %899 = shalt.err (!%p896_p8)
}
 0x169   : > { %s953_s4 = smov 64   ;;  %s954_s25 = smov 4  }
 0x16a   : > { %740 = dma.vmem_to_hbm [thread:$0]  (%p1066_p12), %s1191_s5, 128, %s1189_s27, %s542_s16, %s953_s4, %s953_s4, %s954_s25  }
 0x16b PF: > { %s570_s26 = sand.u32 1, %s930_s12   ;;  %p1263_p10 = scmp.ne.s32.totalorder %s1245_s19, 0 }
 0x16c   : > { %p1264_p13 = scmp.ge.s32.totalorder %s942_s15, 2  ;;  %s571_s10 = scalar_lea.sflag [#allocation5], %s570_s26 }
 0x16e   : > { %p751_p3 = pnand %p1264_p13, %p1263_p10 }
 0x170   : > { %925 = dma.done.wait (!%p751_p3), %s571_s10, 128  }
 0x171   : > { %927 = vsyncadd (!%p751_p3), %s571_s10, 4294967168  ;;  %p17_p7 = scmp.ge.s32.totalorder %s1031_s24, 4   ;;  %s1265_s12 = smov %s934_s13 }
 0x172   : > { %s1266_s13 = smov %s938_s14  ;;  %s1267_s14 = smov %s1062_s17 }
 0x173   : > { %s1268_s15 = smov %s1031_s24  ;;  %19 = sbr.rel (!%p17_p7) target bundleno = 6 (0x6), region = 83 }
 0x17a   :  { %576 = vsyncpa [#allocation4], 1 }
 0x17b   :  { %578 = vsyncpa [#allocation4 + $0x1], 1 }
 0x17c   :  { %579 = vsyncpa [#allocation7], 1 }
 0x17d   :  { %580 = vsyncpa [#allocation5], 1 }
 0x17e   :  { %582 = vsyncpa [#allocation5 + $0x1], 1 }

</bundles_post_ra>
